<compile_context>
chip_gen: v5e
topology: v5e:2x2
jax: 0.10.0
libtpu: 0.0.40
codegen_flags: <defaults>
</compile_context>

<pallas_src>
import functools

import jax
import jax.numpy as jnp
from jax import lax
from jax.experimental import pallas as pl
from jax.experimental.pallas import tpu as pltpu


def _self_attention_kernel(lengths_ref, w_ref, x_ref, o_ref, *, approx_recip):
    # lengths_ref: (B,)   int32 in SMEM (scalar-prefetched valid token counts)
    # w_ref:       (L_t, H)      label-attention weight tile (compute dtype)
    # x_ref:       (B_t, S, H)   batch tile of the inputs (compute dtype)
    # o_ref:       (B_t, L_t, H) output tile (original dtype)
    b_tile, seq_len, _ = x_ref.shape
    l_tile = w_ref.shape[0]
    b_base = pl.program_id(0) * b_tile

    w = w_ref[...]                                            # (L_t, H)

    # Hoisted out of the per-b loop: does not depend on b, and JAX does not
    # CSE broadcast_in_dim.
    pos = lax.broadcasted_iota(jnp.int32, (l_tile, seq_len), 1)

    def body(b, carry):
        x = x_ref[b]                                          # (S, H) dynamic load
        n_valid = lengths_ref[b_base + b]

        # scores[l, s] = sum_h W[l, h] * x[s, h]              -> (L_t, S)
        scores = lax.dot_general(
            w, x,
            dimension_numbers=(((1,), (1,)), ((), ())),
            preferred_element_type=jnp.float32,
        )

        # masked_fill(~mask, -inf); mask rebuilt from the valid length.
        scores = jnp.where(pos < n_valid, scores, -jnp.inf)

        # Softmax over the sequence axis with f32 statistics; normalization is
        # folded after the second matmul.
        mx = jnp.max(scores, axis=-1, keepdims=True)
        p = jnp.exp(scores - mx)
        denom = jnp.sum(p, axis=-1, keepdims=True)            # (L_t, 1)

        out_un = jnp.dot(p.astype(x.dtype), x,
                         preferred_element_type=jnp.float32)  # (L_t, H)
        inv = pl.reciprocal(denom, approx=approx_recip)
        o_ref[b] = (out_un * inv).astype(o_ref.dtype)
        return carry

    # fori_loop (not a static Python unroll) bounds the live range of the
    # (L_t, S) intermediates to a single batch element.
    lax.fori_loop(0, b_tile, body, 0)


def _vmem_budget_bytes():
    """~75% of this chip's physical VMEM (headroom for Mosaic scratch)."""
    try:
        cap = int(pltpu.get_tpu_info().vmem_capacity_bytes)
    except Exception:
        cap = 64 << 20            # conservative fallback (v7x per-core VMEM)
    return (cap * 3) // 4


def _block_bytes(b_t, l_t, s, h, x_bytes, w_bytes, o_bytes):
    # Double-buffered input/weight/output blocks + in-kernel intermediates
    # (scores/p for ONE batch element thanks to fori_loop, plus f32 accums).
    return (2 * b_t * s * h * x_bytes
            + 2 * l_t * h * w_bytes
            + 2 * b_t * l_t * h * o_bytes
            + 3 * l_t * s * 4
            + 2 * l_t * h * 4)


def _select_tiles(batch, labels, seq, hidden, x_bytes, w_bytes, o_bytes,
                  label_tile, budget):
    l_t = min(labels, label_tile)
    grid_l = pl.cdiv(labels, l_t)
    bt_candidates = [bt for bt in (16, 8, 4, 2, 1) if batch % bt == 0]

    def fits(bt, lt):
        return _block_bytes(bt, lt, seq, hidden, x_bytes, w_bytes, o_bytes) <= budget

    b_t = None
    for bt in bt_candidates:
        # Keep >= 2 grid steps along a "parallel" axis (megacore / pipelining).
        if grid_l == 1 and batch >= 2 and batch // bt < 2:
            continue
        if fits(bt, l_t):
            b_t = bt
            break

    if b_t is None:
        # Feasibility guard for long sequences / huge hidden: shrink further.
        b_t = 1
        while l_t > 8 and not fits(b_t, l_t):
            l_t = max(8, l_t // 2)
        # TODO(synk): add an online-softmax S-tiling grid axis for sequences so
        # long that even the (1, S, H) input block does not fit VMEM.
    return b_t, l_t


def self_attention(weight, inputs, masks, *, label_tile=256,
                   compute_dtype=jnp.bfloat16, check_prefix_mask=False):
    """weight: (L, H); inputs: (B, S, H); masks: (B, 1, S) bool.

    masks must be contiguous valid-prefix masks (standard BERT padding mask);
    they are reduced to per-example lengths.  compute_dtype controls the matmul
    operand / streaming precision (accumulation and softmax stats stay f32).
    """
    B, S, H = inputs.shape
    L = weight.shape[0]
    out_dtype = inputs.dtype

    masks_2d = masks.reshape(B, S)
    lengths = jnp.sum(masks_2d.astype(jnp.int32), axis=-1)

    if check_prefix_mask:
        # Host-side check (do not use under jit): the kernel only supports
        # contiguous valid-prefix masks.
        expect = jnp.arange(S, dtype=jnp.int32)[None, :] < lengths[:, None]
        assert bool(jnp.all(masks_2d == expect)), (
            "self_attention kernel assumes contiguous valid-prefix masks")

    compute_dtype = jnp.dtype(compute_dtype)
    w_c = weight.astype(compute_dtype)
    x_c = inputs.astype(compute_dtype)          # halves x HBM traffic when bf16
    approx_recip = compute_dtype != jnp.dtype(jnp.float32)

    x_bytes = compute_dtype.itemsize
    w_bytes = compute_dtype.itemsize
    o_bytes = jnp.dtype(out_dtype).itemsize

    budget = _vmem_budget_bytes()
    B_t, L_t = _select_tiles(B, L, S, H, x_bytes, w_bytes, o_bytes,
                             label_tile, budget)
    grid = (B // B_t, pl.cdiv(L, L_t))

    block_bytes = _block_bytes(B_t, L_t, S, H, x_bytes, w_bytes, o_bytes)
    # block_bytes already includes double-buffering; just add headroom and cap
    # below ~75% of the physical VMEM of this generation.
    vmem_limit = int(min(max(block_bytes + (4 << 20), 16 << 20), budget))

    cost = pl.CostEstimate(
        flops=4 * B * L * S * H,                       # two matmuls
        transcendentals=B * L * S + B * L,             # exp + reciprocal
        bytes_accessed=(B * S * H * x_bytes            # inputs read
                        + grid[0] * L * H * w_bytes    # weight re-read per batch tile
                        + B * L * H * o_bytes          # output write
                        + B * 4),                      # lengths
    )

    kernel = functools.partial(_self_attention_kernel,
                               approx_recip=approx_recip)

    return pl.pallas_call(
        kernel,
        out_shape=jax.ShapeDtypeStruct((B, L, H), out_dtype),
        grid_spec=pltpu.PrefetchScalarGridSpec(
            num_scalar_prefetch=1,
            grid=grid,
            in_specs=[
                # weight tile: varies along the label (inner) axis only
                pl.BlockSpec((L_t, H), lambda bt, lt, lens: (lt, 0)),
                # input tile: constant across the label axis (stays resident)
                pl.BlockSpec((B_t, S, H), lambda bt, lt, lens: (bt, 0, 0)),
            ],
            out_specs=pl.BlockSpec((B_t, L_t, H),
                                   lambda bt, lt, lens: (bt, lt, 0)),
        ),
        compiler_params=pltpu.CompilerParams(
            dimension_semantics=("parallel", "parallel"),
            vmem_limit_bytes=vmem_limit,
        ),
        cost_estimate=cost,
    )(lengths, w_c, x_c)


def _reference(weight, inputs, masks):
    # Pure-JAX reference mirroring the PyTorch forward.
    scores = jnp.einsum("bsh,lh->bls", inputs, weight)
    scores = jnp.where(masks, scores, -jnp.inf)
    attn = jax.nn.softmax(scores, axis=-1)
    return jnp.einsum("bls,bsh->blh", attn, inputs)


if __name__ == "__main__":
    B, S, H, L = 2, 8, 32, 4  # batch, seq, hidden_size, labels_num

    key = jax.random.PRNGKey(0)
    k_w, k_x = jax.random.split(key)

    # Xavier-uniform init for nn.Linear(hidden_size, labels_num, bias=False):
    # weight shape (labels_num, hidden_size), bound = sqrt(6 / (fan_in + fan_out))
    bound = (6.0 / (H + L)) ** 0.5
    weight = jax.random.uniform(k_w, (L, H), jnp.float32, -bound, bound)

    inputs = jax.random.normal(k_x, (B, S, H), jnp.float32)

    # Boolean validity masks, shape (B, 1, S): first batch keeps 6 tokens,
    # second keeps all 8.
    lengths = jnp.array([6, 8], dtype=jnp.int32)
    masks = jnp.arange(S)[None, None, :] < lengths[:, None, None]

    ref = _reference(weight, inputs, masks)

    # f32 path: matches the f32 PyTorch reference tightly.
    out_f32 = self_attention(weight, inputs, masks,
                             compute_dtype=jnp.float32, check_prefix_mask=True)
    jax.block_until_ready(out_f32)
    assert out_f32.shape == (B, L, H)
    assert jnp.allclose(out_f32, ref, atol=1e-5, rtol=1e-5)

    # Default bf16-operand path (f32 accumulation / f32 softmax statistics).
    out_bf16 = self_attention(weight, inputs, masks, check_prefix_mask=True)
    jax.block_until_ready(out_bf16)
    assert out_bf16.shape == (B, L, H)
    assert jnp.allclose(out_bf16, ref, atol=3e-2, rtol=3e-2)

    print("KERNEL_OK")
</pallas_src>

<mosaic_0001>
module attributes {stable_mosaic.version = 11 : i64} {
  func.func @_self_attention_kernel(%arg0: i32, %arg1: i32, %arg2: memref<2xi32, #tpu.memory_space<smem>>, %arg3: memref<4x32xf32, #tpu.memory_space<vmem>>, %arg4: memref<1x8x32xf32, #tpu.memory_space<vmem>>, %arg5: memref<1x4x32xf32, #tpu.memory_space<vmem>>) attributes {dimension_semantics = [#tpu.dimension_semantics<parallel>, #tpu.dimension_semantics<parallel>], iteration_bounds = array<i64: 2, 1>, scalar_prefetch = 1 : i64, scratch_operands = 0 : i64, tpu.core_type = #tpu.core_type<tc>, window_params = [{transform_indices = @transform_0, window_bounds = array<i64: 4, 32>}, {transform_indices = @transform_1, window_bounds = array<i64: 1, 8, 32>}, {transform_indices = @transform_2, window_bounds = array<i64: 1, 4, 32>}]} {
    %c1_i32 = arith.constant 1 : i32
    %0 = arith.muli %arg0, %c1_i32 : i32
    %c0 = arith.constant 0 : index
    %c0_0 = arith.constant 0 : index
    %1 = vector.load %arg3[%c0, %c0_0] : memref<4x32xf32, #tpu.memory_space<vmem>>, vector<4x32xf32>
    %2 = tpu.iota {dimensions = array<i32: 1>} : vector<4x8xi32>
    %c0_i32 = arith.constant 0 : i32
    %3 = arith.index_cast %c0_i32 : i32 to index
    %c0_1 = arith.constant 0 : index
    %c0_2 = arith.constant 0 : index
    %4 = vector.load %arg4[%3, %c0_1, %c0_2] : memref<1x8x32xf32, #tpu.memory_space<vmem>>, vector<1x8x32xf32>
    %5 = vector.shape_cast %4 : vector<1x8x32xf32> to vector<8x32xf32>
    %6 = arith.addi %0, %c0_i32 : i32
    %7 = arith.index_cast %6 : i32 to index
    %8 = memref.load %arg2[%7] : memref<2xi32, #tpu.memory_space<smem>>
    %cst = arith.constant dense<0.000000e+00> : vector<4x8xf32>
    %9 = tpu.matmul %1, %5, %cst {dimension_numbers = #tpu.dot_dimension_numbers<[1], [1], [0], [0], [0, 0, 1, 0], [], []>} : vector<4x32xf32>, vector<8x32xf32>, vector<4x8xf32> -> vector<4x8xf32>
    %10 = vector.broadcast %8 : i32 to vector<4x8xi32>
    %11 = arith.cmpi slt, %2, %10 : vector<4x8xi32>
    %cst_3 = arith.constant 0xFF800000 : f32
    %12 = vector.broadcast %cst_3 : f32 to vector<4x8xf32>
    %13 = arith.select %11, %9, %12 : vector<4x8xi1>, vector<4x8xf32>
    %cst_4 = arith.constant dense<0xFF800000> : vector<4xf32>
    %14 = vector.multi_reduction <maximumf>, %13, %cst_4 [1] : vector<4x8xf32> to vector<4xf32>
    %15 = vector.shape_cast %14 : vector<4xf32> to vector<4x1xf32>
    %16 = vector.broadcast %15 : vector<4x1xf32> to vector<4x8xf32>
    %17 = arith.subf %13, %16 : vector<4x8xf32>
    %18 = math.exp %17 : vector<4x8xf32>
    %cst_5 = arith.constant dense<0.000000e+00> : vector<4xf32>
    %19 = vector.multi_reduction <add>, %18, %cst_5 [1] : vector<4x8xf32> to vector<4xf32>
    %20 = vector.shape_cast %19 : vector<4xf32> to vector<4x1xf32>
    %cst_6 = arith.constant dense<0.000000e+00> : vector<4x32xf32>
    %21 = tpu.matmul %18, %5, %cst_6 {dimension_numbers = #tpu.dot_dimension_numbers<[1], [0], [0], [1], [0, 0, 1, 1], [], []>} : vector<4x8xf32>, vector<8x32xf32>, vector<4x32xf32> -> vector<4x32xf32>
    %22 = tpu.reciprocal %20 : vector<4x1xf32> -> vector<4x1xf32>
    %23 = vector.broadcast %22 : vector<4x1xf32> to vector<4x32xf32>
    %24 = arith.mulf %21, %23 : vector<4x32xf32>
    %25 = arith.index_cast %c0_i32 : i32 to index
    %c0_7 = arith.constant 0 : index
    %c0_8 = arith.constant 0 : index
    %26 = vector.load %arg5[%25, %c0_7, %c0_8] : memref<1x4x32xf32, #tpu.memory_space<vmem>>, vector<1x4x32xf32>
    %27 = vector.shape_cast %26 : vector<1x4x32xf32> to vector<4x32xf32>
    %28 = vector.shape_cast %24 : vector<4x32xf32> to vector<1x4x32xf32>
    tpu.vector_store %arg5[%25, %c0_7, %c0_8], %28 {strides = array<i32>} : memref<1x4x32xf32, #tpu.memory_space<vmem>>, vector<1x4x32xf32>,
    %c1_i32_9 = arith.constant 1 : i32
    return
  }
  func.func @transform_0(%arg0: i32, %arg1: i32, %arg2: memref<2xi32, #tpu.memory_space<smem>>) -> (i32, i32) {
    %c0_i32 = arith.constant 0 : i32
    %c0_i32_0 = arith.constant 0 : i32
    return %arg1, %c0_i32 : i32, i32
  }
  func.func @transform_1(%arg0: i32, %arg1: i32, %arg2: memref<2xi32, #tpu.memory_space<smem>>) -> (i32, i32, i32) {
    %c0_i32 = arith.constant 0 : i32
    %c0_i32_0 = arith.constant 0 : i32
    %c0_i32_1 = arith.constant 0 : i32
    return %arg0, %c0_i32, %c0_i32_0 : i32, i32, i32
  }
  func.func @transform_2(%arg0: i32, %arg1: i32, %arg2: memref<2xi32, #tpu.memory_space<smem>>) -> (i32, i32, i32) {
    %c0_i32 = arith.constant 0 : i32
    %c0_i32_0 = arith.constant 0 : i32
    return %arg0, %arg1, %c0_i32 : i32, i32, i32
  }
}

</mosaic_0001>

<bundles_post_ra>
// kernel: tpu_custom_call.1
= control target key start
LH: loop header
LB: loop body
LE: loop exit
PB: predicated region body
PF: predicated region fallthrough
CT: control target
= control target key end

     0   :  { %s660_s15 = smov [#allocation3]   ;;  %s836_s0 = inlined_call_operand.hbm [shape: s32[2], index: 0, kind: input, shape index: {}]   ;;  %s837_s1 = inlined_call_operand.hbm [shape: f32[4,32], index: 1, kind: input, shape index: {}]   ;;  %s838_s2 = inlined_call_operand.hbm [shape: f32[2,8,32], index: 2, kind: input, shape index: {}]   ;;  %s839_s3 = inlined_call_operand.hbm [shape: f32[2,4,32], index: 3, kind: output, shape index: {}]  }
   0x1   :  { %s9_s14 = sshll.u32 %s836_s0, 4  ;;  %s10_s14 = int_to_ptr.hbm [resolvable:$true] %s9_s14 }
   0x2   :  { %12 = dma.hbm_to_smem %s10_s14, 16, %s660_s15, [#allocation2] }
   0x3   :  { %622 = dma.done.wait [#allocation2], 16 }
   0x4   :  { %623 = vsyncadd [#allocation2], 4294967280 }
   0x5   :  { %15 = sfence }
   0x6   :  { %16 = vsyncpa [#allocation5], 0 }
   0x7   :  { %17 = vsyncpa [#allocation8], 0 }
   0x8   :  { %19 = vsyncpa [#allocation8 + $0x1], 0 }
   0x9   :  { %20 = vsyncpa [#allocation6], 0 }
   0xa   :  { %22 = vsyncpa [#allocation6 + $0x1], 0  ;;  %s685_s16 = smov 0   ;;  %s687_s17 = smov 0  }
   0xb   :  { %s689_s18 = smov 0   ;;  %s691_s19 = smov 0  }
   0xc   :  { %s693_s0 = smov 0   ;;  %s695_s20 = smov 0  }
   0xd LB: > { %s402_s21 = sadd.s32 4294967295, %s658_s20   ;;  %s403_s22 = sadd.s32 4294967294, %s658_s20   ;;  %s658_s20 = sphi %s695_s20, %s28_s20   ;;  %s654_s0 = sphi %s693_s0, %s851_s0   ;;  %s650_s19 = sphi %s691_s19, %s850_s19   ;;  %s646_s18 = sphi %s689_s18, %s849_s18   ;;  %s642_s17 = sphi %s687_s17, %s848_s17   ;;  %s638_s16 = sphi %s685_s16, %s847_s16  }
   0xe   : > { %p86_p0 = scmp.ne.s32.totalorder %s642_s17, %s638_s16  ;;  %p719_p1 = scmp.eq.s32.totalorder %s402_s21, 0 }
   0xf   : > { %p723_p2 = scmp.eq.s32.totalorder %s402_s21, 1  ;;  %p118_p3 = scmp.eq.s32.totalorder %s403_s22, 1 }
  0x10   : > { %p729_p4 = por %p719_p1, %p86_p0  ;;  %p404_p5 = scmp.ge.s32.totalorder %s658_s20, 1 }
  0x11   : > { %p734_p6 = por %p118_p3, %p86_p0  ;;  %p125_p7 = scmp.lt.s32.totalorder %s658_s20, 3 }
  0x12   : > { %s139_s29 = sshll.u32 %s837_s1, 4  ;;  %p406_p9 = scmp.ge.s32.totalorder %s658_s20, 2  ;;  %s140_s29 = int_to_ptr.hbm [resolvable:$true] %s139_s29 }
  0x13   : > { %p742_p8 = pnand %p404_p5, %p125_p7  ;;  %s661_s4 = smov [#allocation4]  }
  0x14   : > { %s141_s5 = sshll.u32 %s661_s4, 4  ;;  %s40_s6 = sadd.s32 1, %s654_s0  ;;  %s142_s5 = int_to_ptr.vmem [resolvable:$true] %s141_s5 }
  0x15   : > { %p428_p10 = pneg %p742_p8  ;;  %p42_p12 = scmp.ge.s32.totalorder %s40_s6, 2 }
  0x16   : > { %s73_s7 = sadd.s32 1, %s646_s18  ;;  %p80_p13 = scmp.ne.s32.totalorder %s646_s18, %s642_s17 }
  0x17   : > { %p429_p11 = pnand %p428_p10, %p719_p1  ;;  %p81_p0 = scmp.eq.s32.totalorder %s658_s20, 0 }
  0x18   : > { %s853_s6 = smov (%p42_p12, %s40_s6), 0  ;;  %p764_p5 = por %p723_p2, %p80_p13 }
  0x19   : > { %431 = dma.hbm_to_vmem [thread:$0]  (!%p429_p11), %s140_s29, 64, %s142_s5, [#allocation5]  }
  0x1a   : > { %p758_p3 = por %p81_p0, %p80_p13  ;;  %s70_s10 = ssub.s32 %s654_s0, %s853_s6 }
  0x1b   : > { %p441_p7 = scmp.lt.s32.totalorder %s658_s20, 2  ;;  %p71_p10 = scmp.eq.s32.totalorder %s70_s10, 0 }
  0x1c   : > { %s152_s11 = sand.u32 1, %s646_s18   ;;  %s408_s14 = sshll.u32 %s654_s0, 3 }
  0x1d   : > { %s407_s12 = sshll.u32 %s152_s11, 3  ;;  %s160_s22 = scalar_lea.hbm %s838_s2, %s408_s14 }
  0x1e   : > { %s773_s13 = scalar_select %p71_p10, %s646_s18, %s73_s7  }
  0x1f   : > { %s156_s27 = scalar_lea.vmem [#allocation7], %s407_s12  ;;  %s162_s24 = sshll.u32 %s160_s22, 4  ;;  %s163_s24 = int_to_ptr.hbm [resolvable:$true] %s162_s24 }
  0x20   : > { %s164_s28 = sshll.u32 %s156_s27, 4  ;;  %p433_p2 = pnand %p441_p7, %p758_p3  ;;  %s165_s28 = int_to_ptr.vmem [resolvable:$true] %s164_s28 }
  0x21   : > { %s153_s29 = scalar_lea.sflag [#allocation8], %s152_s11  ;;  %173 = sbr.rel (%p742_p8) target bundleno = 441 (0x1b9), region = 28 }
  0x22   : > { %435 = dma.hbm_to_vmem [thread:$0]  (!%p433_p2), %s163_s24, 128, %s165_s28, %s153_s29  }
  0x26   : > { %625 = dma.done.wait (%p719_p1), [#allocation5], 64  }
  0x27   : > { %627 = vsyncadd (%p719_p1), [#allocation5], 4294967232  ;;  %s788_s4 = sand.u32 1, %s642_s17  }
  0x28   : > { %s411_s5 = sshll.u32 %s788_s4, 3  ;;  %s181_s7 = scalar_lea.sflag [#allocation8], %s788_s4 }
  0x29   : > { %s184_s8 = scalar_lea.vmem [#allocation7], %s411_s5 }
  0x2a   : > { %629 = dma.done.wait (%p729_p4), %s181_s7, 128  }
  0x2b   : > { %631 = vsyncadd (%p729_p4), %s181_s7, 4294967168  ;;  %vm211_vm0 = vcmask 261120   ;;  %v209_v0 = vld [vmem:[%s184_s8] sm:$0xff]  ;;  %v206_v1 = vld [vmem:[#allocation4] sm:$0xf]  ;;  %s210_s23 = sld [smem:[#allocation3 + %s650_s19]]  ;;  %v207_v2 = vlaneseq }
  0x2c   : > { %413 = vmatpush.xpose.msk.msra.mxu0 %vm211_vm0, %v209_v0  ;;  %270 = vmatpush.msra.mxu1 %v209_v0  ;;  %vm241_vm2 = vcmask 60416   ;;  %vm251_vm3 = vcmask 64512   ;;  %s412_s25 = sshll.u32 %s788_s4, 2  ;;  %s417_s30 = sshll.u32 %s650_s19, 2  ;;  %vm290_vm8 = vcmask 257024  }
  0x2d   : > { %v208_v3 = vand.u32 127, %v207_v2  ;;  %s304_s12 = scalar_lea.hbm %s839_s3, %s417_s30  ;;  %s205_s14 = scalar_lea.vmem [#allocation9], %s412_s25 }
  0x2e   : > { %s306_s15 = sshll.u32 %s205_s14, 4  ;;  %s308_s21 = sshll.u32 %s304_s12, 4  ;;  %s307_s15 = int_to_ptr.vmem [resolvable:$true] %s306_s15  ;;  %s309_s21 = int_to_ptr.hbm [resolvable:$true] %s308_s21 }
  0x2f   : > { %414 = vmatmul.msk.f32.vlgmr.msra.gmra.mxu0 %vm211_vm0, %v206_v1  ;;  %s293_s19 = scalar_lea.sflag [#allocation6], %s788_s4  ;;  %s584_s22 = sshra.s32 %s309_s21, 4  ;;  %s585_s22 = int_to_ptr.hbm [resolvable:$true] %s584_s22 }
  0x30   : > { %s586_s27 = scalar_lea.hbm %s585_s22, 4  ;;  %s590_s29 = scalar_lea.hbm %s839_s3, 8 }
  0x31   : > { %v238_v4 = vstv %s210_s23  ;;  %p587_p1 = scmp.ne.s32.totalorder %s585_s22, %s586_s27  ;;  %p591_p11 = scmp.lt.s32.totalorder %s585_s22, %s839_s3 }
  0x32   : > { %vm239_vm1 = vcmp.lt.s32.totalorder %v208_v3, %v238_v4  ;;  %p592_p12 = scmp.lt.s32.totalorder %s590_s29, %s586_s27 }
  0x33   : > { %p588_p4 = pnand %p587_p1, %p764_p5 }
  0x34   : > { %p593_p13 = por %p592_p12, %p591_p11 }
  0x35   : > { %p589_p8 = pneg %p588_p4 }
  0x37   : > { %p594_p0 = pnand %p593_p13, %p589_p8 }
  0xac   : > { %v235_v5 = vpop.f32.mrf.mxu0 }
  0xad   : > { %v240_v6 = vsel %vm239_vm1, %v235_v5, -inf }
  0xae   : > { %v242_v7 = vsel %vm241_vm2, %v240_v6, -inf }
  0xaf   : > { %243 = vmax.xlane.f32.xlu0 %v242_v7 }
 0x122   : > { %v244_v8 = vpop.xlane.xlu0 %243 }
 0x123   : > { %v245_v9 = vsub.f32 %v240_v6, %v244_v8 }
 0x125   : > { %v246_v10 = vmul.f32 1.442695, %v245_v9 }
 0x127   : > { %494 = vpow2.f32 %v246_v10 }
 0x12d   : > { %v495_v11 = vpop.eup %494 }
 0x12e   : > { %415 = vmatmul.msk.f32.vlgmr.msra.gmra.mxu1 %vm251_vm3, %v495_v11  ;;  %v248_v12 = vsel %vm241_vm2, %v495_v11, 0.0 }
 0x12f   : > { %249 = vadd.xlane.f32.xlu0 %v248_v12 }
 0x1a2   : > { %v250_v13 = vpop.xlane.xlu0 %249 }
 0x1a3   : > { %496 = vrcp.f32 %v250_v13  ;;  %v286_v17 = vand.u32 2147483648, %v250_v13  ;;  %v284_v19 = vand.u32 2147483647, %v250_v13  ;;  %vm280_vm5 = vweird.f32 %v250_v13 }
 0x1a5   : > { %v287_v21 = vor.u32 1.1754944e-38, %v286_v17  ;;  %vm285_vm7 = vcmp.eq.f32.partialorder %v284_v19, 8.507059e+37 }
 0x1a9   : > { %v497_v14 = vpop.eup %496 }
 0x1aa   : > { %v276_v15 = vmul.f32 %v497_v14, %v250_v13  ;;  %vm281_vm4 = vweird.f32 %v497_v14 }
 0x1ab   : > { %vm282_vm6 = vmor %vm280_vm5, %vm281_vm4  ;;  %v272_v23 = vpop.f32.mrf.mxu1 }
 0x1ac   : > { %v277_v16 = vsub.f32 1.0, %v276_v15 }
 0x1ae   : > { %v278_v18 = vmul.f32 %v497_v14, %v277_v16 }
 0x1b0   : > { %v279_v20 = vadd.f32 %v497_v14, %v278_v18 }
 0x1b2   : > { %v283_v22 = vsel %vm282_vm6, %v497_v14, %v279_v20 }
 0x1b3   : > { %v288_v24 = vsel %vm285_vm7, %v287_v21, %v283_v22 }
 0x1b4   : > { %v289_v25 = vmul.f32 %v288_v24, %v272_v23 }
 0x1b6   : > { %291 = vst.msk [vmem:[%s205_s14] sm:$0xf] %vm290_vm8, %v289_v25 }
 0x1b7   : > { %597 = shalt.err (!%p594_p0)
}
 0x1b8   : > { %426 = dma.vmem_to_hbm [thread:$0]  (%p764_p5), %s307_s15, 64, %s309_s21, %s293_s19  }
 0x1b9 PF: > { %s320_s4 = sand.u32 1, %s638_s16   ;;  %p437_p3 = pnand %p406_p9, %p734_p6 }
 0x1ba   : > { %s321_s8 = scalar_lea.sflag [#allocation6], %s320_s4 }
 0x1bb   : > { %p438_p7 = pneg %p437_p3 }
 0x1bd   : > { %633 = dma.done.wait (%p438_p7), %s321_s8, 64  }
 0x1be   : > { %635 = vsyncadd (%p438_p7), %s321_s8, 4294967232  ;;  %s28_s20 = sadd.s32 1, %s658_s20   ;;  %s847_s16 = smov %s642_s17 }
 0x1bf   : > { %p25_p10 = scmp.ge.s32.totalorder %s28_s20, 4   ;;  %s848_s17 = smov %s646_s18 }
 0x1c0   : > { %s849_s18 = smov %s773_s13  ;;  %s850_s19 = smov %s654_s0 }
 0x1c1   : > { %s851_s0 = smov %s853_s6  ;;  %27 = sbr.rel (!%p25_p10) target bundleno = 13 (0xd), region = 79 }
 0x1c6   :  { %327 = vsyncpa [#allocation5], 1 }
 0x1c7   :  { %329 = vsyncpa [#allocation5 + $0x1], 1 }
 0x1c8   :  { %330 = vsyncpa [#allocation8], 1 }
 0x1c9   :  { %332 = vsyncpa [#allocation8 + $0x1], 1 }
 0x1ca   :  { %333 = vsyncpa [#allocation6], 1 }
 0x1cb   :  { %335 = vsyncpa [#allocation6 + $0x1], 1 }

</bundles_post_ra>
